<compile_context>
chip_gen: v5e
topology: v5e:2x2
jax: 0.10.0
libtpu: 0.0.40
codegen_flags: <defaults>
</compile_context>

<pallas_src>
import jax
import jax.numpy as jnp
from jax.experimental import pallas as pl
from jax.experimental.pallas import tpu as pltpu

# ----------------------- demo configuration (mirrors args) -----------------------
BATCH = 2
WINDOW_SIZE = 16     # T (even)
IN_PLANES = 8        # C = in_planes / first_conv
HIDDEN_MULT = 2      # args.hidden_size  ->  H = C * HIDDEN_MULT
LEAKY_SLOPE = 0.01


# --------------------------------- fused kernel ---------------------------------
def _branch(x_blc, w1, b1, w2, b2):
    """P(.) / U(.) branch on a time-major (B, L, C) block (channels on lanes).

    ReplicationPad1d(2) -> Conv1d(C->H, k=3) -> LeakyReLU(0.01) -> Dropout(eval: id)
    -> Conv1d(H->C, k=3) -> Tanh.
    Weights are in im2col layout: w1 (3C, H), b1 (1, H), w2 (3H, C), b2 (1, C),
    with row index = tap*k + in_channel, i.e. w1[k*C + c, h] == torch_w1[h, c, k].
    """
    B, L, C = x_blc.shape
    Lt = L + 2
    H = w1.shape[1]

    # ReplicationPad1d(2) along time (sublane axis).
    left = x_blc[:, :1, :]
    right = x_blc[:, L - 1:, :]
    xp = jnp.concatenate([left, left, x_blc, right, right], axis=1)       # (B, L+4, C)

    # conv1 as a single matmul: 3-tap im2col stacked on the lane axis, batch folded
    # onto sublanes -> one MXU push for the whole batch.
    xs = jnp.concatenate([xp[:, k:k + Lt, :] for k in range(3)], axis=2)  # (B, Lt, 3C)
    o1 = jnp.dot(xs.reshape(B * Lt, 3 * C), w1,
                 preferred_element_type=jnp.float32) + b1                 # (B*Lt, H)
    o1 = jnp.where(o1 >= 0, o1, LEAKY_SLOPE * o1)                         # LeakyReLU
    # Dropout(p=0.5) in eval mode: identity.
    o1 = o1.reshape(B, Lt, H)

    # conv2 as a single matmul (valid conv, Lt -> L).
    o1s = jnp.concatenate([o1[:, k:k + L, :] for k in range(3)], axis=2)  # (B, L, 3H)
    o2 = jnp.dot(o1s.reshape(B * L, 3 * H), w2,
                 preferred_element_type=jnp.float32) + b2                 # (B*L, C)
    return jnp.tanh(o2).reshape(B, L, C)


def _lifting_kernel(x_ref, pw1, pb1, pw2, pb2, uw1, ub1, uw2, ub2, c_ref, d_ref):
    B, T, C = x_ref.shape
    L = T // 2
    # Splitting: even/odd strided reads straight out of the VMEM block (no host-side
    # transpose/slice ops between XLA and the kernel).
    xe = x_ref[:, pl.ds(0, L, stride=2), :]                               # (B, L, C)
    xo = x_ref[:, pl.ds(1, L, stride=2), :]                               # (B, L, C)

    d = xo - _branch(xe, pw1[...], pb1[...], pw2[...], pb2[...])          # details
    c = xe + _branch(d, uw1[...], ub1[...], uw2[...], ub2[...])           # approx

    # The reference returns the permuted (B, C, L) tensors (c, d) == (L, H).
    c_ref[...] = jnp.transpose(c, (0, 2, 1))
    d_ref[...] = jnp.transpose(d, (0, 2, 1))


def lifting_scheme_level(x, params):
    """x: (B, T, C) float32.  Returns (L, H) = (c, d), each (B, C, T//2)."""
    B, T, C = x.shape
    L = T // 2
    vmem = pl.BlockSpec(memory_space=pltpu.MemorySpace.VMEM)   # whole array, VMEM resident
    return pl.pallas_call(
        _lifting_kernel,
        out_shape=(jax.ShapeDtypeStruct((B, C, L), jnp.float32),
                   jax.ShapeDtypeStruct((B, C, L), jnp.float32)),
        in_specs=[vmem] * 9,
        out_specs=(vmem, vmem),
    )(x, params["pw1"], params["pb1"], params["pw2"], params["pb2"],
      params["uw1"], params["ub1"], params["uw2"], params["ub2"])


# -------------------- pure-JAX reference (torch-layout weights) --------------------
def _ref_conv1d(x_bcl, w, b):
    """torch.nn.Conv1d, stride 1, no padding. x: (B, Cin, L), w: (Cout, Cin, K), b: (Cout,)."""
    K = w.shape[2]
    Lo = x_bcl.shape[2] - K + 1
    out = b[None, :, None]
    for k in range(K):
        out = out + jnp.einsum("oc,bcl->bol", w[:, :, k], x_bcl[:, :, k:k + Lo],
                               precision=jax.lax.Precision.HIGHEST)
    return out


def _ref_branch(x_bcl, w1, b1, w2, b2):
    left = x_bcl[:, :, :1]
    right = x_bcl[:, :, -1:]
    xp = jnp.concatenate([left, left, x_bcl, right, right], axis=2)   # ReplicationPad1d(2)
    o1 = _ref_conv1d(xp, w1, b1)
    o1 = jnp.where(o1 >= 0, o1, LEAKY_SLOPE * o1)
    return jnp.tanh(_ref_conv1d(o1, w2, b2))


def ref_forward(x, tp):
    xe = jnp.transpose(x[:, 0::2, :], (0, 2, 1))
    xo = jnp.transpose(x[:, 1::2, :], (0, 2, 1))
    d = xo - _ref_branch(xe, tp["p_w1"], tp["p_b1"], tp["p_w2"], tp["p_b2"])
    c = xe + _ref_branch(d, tp["u_w1"], tp["u_b1"], tp["u_w2"], tp["u_b2"])
    return c, d


# ------------------------------------- main -------------------------------------
if __name__ == "__main__":
    key = jax.random.PRNGKey(0)
    kx, kp = jax.random.split(key)
    B, T, C = BATCH, WINDOW_SIZE, IN_PLANES
    H = C * HIDDEN_MULT

    x = jax.random.normal(kx, (B, T, C), jnp.float32)

    ks = jax.random.split(kp, 8)
    f = lambda k, s: 0.1 * jax.random.normal(k, s, jnp.float32)
    # torch-layout parameters: Conv1d weight (C_out, C_in, K), bias (C_out,)
    torch_params = dict(
        p_w1=f(ks[0], (H, C, 3)), p_b1=f(ks[1], (H,)),
        p_w2=f(ks[2], (C, H, 3)), p_b2=f(ks[3], (C,)),
        u_w1=f(ks[4], (H, C, 3)), u_b1=f(ks[5], (H,)),
        u_w2=f(ks[6], (C, H, 3)), u_b2=f(ks[7], (C,)),
    )
    # convert to the kernel's im2col layout: row = tap*Cin + cin.
    params = dict(
        pw1=jnp.transpose(torch_params["p_w1"], (2, 1, 0)).reshape(3 * C, H),
        pb1=torch_params["p_b1"].reshape(1, H),
        pw2=jnp.transpose(torch_params["p_w2"], (2, 1, 0)).reshape(3 * H, C),
        pb2=torch_params["p_b2"].reshape(1, C),
        uw1=jnp.transpose(torch_params["u_w1"], (2, 1, 0)).reshape(3 * C, H),
        ub1=torch_params["u_b1"].reshape(1, H),
        uw2=jnp.transpose(torch_params["u_w2"], (2, 1, 0)).reshape(3 * H, C),
        ub2=torch_params["u_b2"].reshape(1, C),
    )

    c, d = jax.jit(lifting_scheme_level)(x, params)
    jax.block_until_ready((c, d))
    assert c.shape == (B, C, T // 2) and d.shape == (B, C, T // 2)
    assert bool(jnp.all(jnp.isfinite(c))) and bool(jnp.all(jnp.isfinite(d)))

    # correctness vs. the eval-mode PyTorch math (pure-JAX reference).
    c_ref, d_ref = ref_forward(x, torch_params)
    assert jnp.allclose(c, c_ref, atol=5e-3, rtol=5e-3), float(jnp.max(jnp.abs(c - c_ref)))
    assert jnp.allclose(d, d_ref, atol=5e-3, rtol=5e-3), float(jnp.max(jnp.abs(d - d_ref)))

    print("KERNEL_OK")
</pallas_src>

<mosaic_0001>
module attributes {stable_mosaic.version = 11 : i64} {
  func.func @_lifting_kernel(%arg0: memref<2x16x8xf32, #tpu.memory_space<vmem>>, %arg1: memref<24x16xf32, #tpu.memory_space<vmem>>, %arg2: memref<1x16xf32, #tpu.memory_space<vmem>>, %arg3: memref<48x8xf32, #tpu.memory_space<vmem>>, %arg4: memref<1x8xf32, #tpu.memory_space<vmem>>, %arg5: memref<24x16xf32, #tpu.memory_space<vmem>>, %arg6: memref<1x16xf32, #tpu.memory_space<vmem>>, %arg7: memref<48x8xf32, #tpu.memory_space<vmem>>, %arg8: memref<1x8xf32, #tpu.memory_space<vmem>>, %arg9: memref<2x8x8xf32, #tpu.memory_space<vmem>>, %arg10: memref<2x8x8xf32, #tpu.memory_space<vmem>>) attributes {dimension_semantics = [], scalar_prefetch = 0 : i64, scratch_operands = 0 : i64, tpu.core_type = #tpu.core_type<tc>} {
    %c0 = arith.constant 0 : index
    %c0_0 = arith.constant 0 : index
    %c0_1 = arith.constant 0 : index
    %0 = tpu.strided_load %arg0[%c0, %c0_0, %c0_1] {strides = array<i32: 1, 2, 1>} : memref<2x16x8xf32, #tpu.memory_space<vmem>>, vector<2x8x8xf32>
    %c0_2 = arith.constant 0 : index
    %c1 = arith.constant 1 : index
    %c0_3 = arith.constant 0 : index
    %1 = tpu.strided_load %arg0[%c0_2, %c1, %c0_3] {strides = array<i32: 1, 2, 1>} : memref<2x16x8xf32, #tpu.memory_space<vmem>>, vector<2x8x8xf32>
    %c0_4 = arith.constant 0 : index
    %c0_5 = arith.constant 0 : index
    %2 = vector.load %arg1[%c0_4, %c0_5] : memref<24x16xf32, #tpu.memory_space<vmem>>, vector<24x16xf32>
    %c0_6 = arith.constant 0 : index
    %c0_7 = arith.constant 0 : index
    %3 = vector.load %arg2[%c0_6, %c0_7] : memref<1x16xf32, #tpu.memory_space<vmem>>, vector<1x16xf32>
    %c0_8 = arith.constant 0 : index
    %c0_9 = arith.constant 0 : index
    %4 = vector.load %arg3[%c0_8, %c0_9] : memref<48x8xf32, #tpu.memory_space<vmem>>, vector<48x8xf32>
    %c0_10 = arith.constant 0 : index
    %c0_11 = arith.constant 0 : index
    %5 = vector.load %arg4[%c0_10, %c0_11] : memref<1x8xf32, #tpu.memory_space<vmem>>, vector<1x8xf32>
    %6 = vector.extract_strided_slice %0 {offsets = [0, 0, 0], sizes = [2, 1, 8], strides = [1, 1, 1]} : vector<2x8x8xf32> to vector<2x1x8xf32>
    %7 = vector.extract_strided_slice %0 {offsets = [0, 7, 0], sizes = [2, 1, 8], strides = [1, 1, 1]} : vector<2x8x8xf32> to vector<2x1x8xf32>
    %8 = tpu.concatenate %6, %6, %0, %7, %7 in 1 : vector<2x1x8xf32>, vector<2x1x8xf32>, vector<2x8x8xf32>, vector<2x1x8xf32>, vector<2x1x8xf32> -> vector<2x12x8xf32>
    %9 = vector.extract_strided_slice %8 {offsets = [0, 0, 0], sizes = [2, 10, 8], strides = [1, 1, 1]} : vector<2x12x8xf32> to vector<2x10x8xf32>
    %10 = vector.extract_strided_slice %8 {offsets = [0, 1, 0], sizes = [2, 10, 8], strides = [1, 1, 1]} : vector<2x12x8xf32> to vector<2x10x8xf32>
    %11 = vector.extract_strided_slice %8 {offsets = [0, 2, 0], sizes = [2, 10, 8], strides = [1, 1, 1]} : vector<2x12x8xf32> to vector<2x10x8xf32>
    %12 = tpu.concatenate %9, %10, %11 in 2 : vector<2x10x8xf32>, vector<2x10x8xf32>, vector<2x10x8xf32> -> vector<2x10x24xf32>
    %13 = vector.shape_cast %12 : vector<2x10x24xf32> to vector<20x24xf32>
    %cst = arith.constant dense<0.000000e+00> : vector<20x16xf32>
    %14 = tpu.matmul %13, %2, %cst {dimension_numbers = #tpu.dot_dimension_numbers<[1], [0], [0], [1], [0, 0, 1, 1], [], []>} : vector<20x24xf32>, vector<24x16xf32>, vector<20x16xf32> -> vector<20x16xf32>
    %15 = vector.broadcast %3 : vector<1x16xf32> to vector<20x16xf32>
    %16 = arith.addf %14, %15 : vector<20x16xf32>
    %cst_12 = arith.constant 0.000000e+00 : f32
    %17 = vector.broadcast %cst_12 : f32 to vector<20x16xf32>
    %18 = arith.cmpf oge, %16, %17 : vector<20x16xf32>
    %cst_13 = arith.constant 0.00999999977 : f32
    %19 = vector.broadcast %cst_13 : f32 to vector<20x16xf32>
    %20 = arith.mulf %19, %16 : vector<20x16xf32>
    %21 = arith.select %18, %16, %20 : vector<20x16xi1>, vector<20x16xf32>
    %22 = vector.shape_cast %21 : vector<20x16xf32> to vector<2x10x16xf32>
    %23 = vector.extract_strided_slice %22 {offsets = [0, 0, 0], sizes = [2, 8, 16], strides = [1, 1, 1]} : vector<2x10x16xf32> to vector<2x8x16xf32>
    %24 = vector.extract_strided_slice %22 {offsets = [0, 1, 0], sizes = [2, 8, 16], strides = [1, 1, 1]} : vector<2x10x16xf32> to vector<2x8x16xf32>
    %25 = vector.extract_strided_slice %22 {offsets = [0, 2, 0], sizes = [2, 8, 16], strides = [1, 1, 1]} : vector<2x10x16xf32> to vector<2x8x16xf32>
    %26 = tpu.concatenate %23, %24, %25 in 2 : vector<2x8x16xf32>, vector<2x8x16xf32>, vector<2x8x16xf32> -> vector<2x8x48xf32>
    %27 = vector.shape_cast %26 : vector<2x8x48xf32> to vector<16x48xf32>
    %cst_14 = arith.constant dense<0.000000e+00> : vector<16x8xf32>
    %28 = tpu.matmul %27, %4, %cst_14 {dimension_numbers = #tpu.dot_dimension_numbers<[1], [0], [0], [1], [0, 0, 1, 1], [], []>} : vector<16x48xf32>, vector<48x8xf32>, vector<16x8xf32> -> vector<16x8xf32>
    %29 = vector.broadcast %5 : vector<1x8xf32> to vector<16x8xf32>
    %30 = arith.addf %28, %29 : vector<16x8xf32>
    %31 = math.tanh %30 : vector<16x8xf32>
    %32 = vector.shape_cast %31 : vector<16x8xf32> to vector<2x8x8xf32>
    %33 = arith.subf %1, %32 : vector<2x8x8xf32>
    %c0_15 = arith.constant 0 : index
    %c0_16 = arith.constant 0 : index
    %34 = vector.load %arg5[%c0_15, %c0_16] : memref<24x16xf32, #tpu.memory_space<vmem>>, vector<24x16xf32>
    %c0_17 = arith.constant 0 : index
    %c0_18 = arith.constant 0 : index
    %35 = vector.load %arg6[%c0_17, %c0_18] : memref<1x16xf32, #tpu.memory_space<vmem>>, vector<1x16xf32>
    %c0_19 = arith.constant 0 : index
    %c0_20 = arith.constant 0 : index
    %36 = vector.load %arg7[%c0_19, %c0_20] : memref<48x8xf32, #tpu.memory_space<vmem>>, vector<48x8xf32>
    %c0_21 = arith.constant 0 : index
    %c0_22 = arith.constant 0 : index
    %37 = vector.load %arg8[%c0_21, %c0_22] : memref<1x8xf32, #tpu.memory_space<vmem>>, vector<1x8xf32>
    %38 = vector.extract_strided_slice %33 {offsets = [0, 0, 0], sizes = [2, 1, 8], strides = [1, 1, 1]} : vector<2x8x8xf32> to vector<2x1x8xf32>
    %39 = vector.extract_strided_slice %33 {offsets = [0, 7, 0], sizes = [2, 1, 8], strides = [1, 1, 1]} : vector<2x8x8xf32> to vector<2x1x8xf32>
    %40 = tpu.concatenate %38, %38, %33, %39, %39 in 1 : vector<2x1x8xf32>, vector<2x1x8xf32>, vector<2x8x8xf32>, vector<2x1x8xf32>, vector<2x1x8xf32> -> vector<2x12x8xf32>
    %41 = vector.extract_strided_slice %40 {offsets = [0, 0, 0], sizes = [2, 10, 8], strides = [1, 1, 1]} : vector<2x12x8xf32> to vector<2x10x8xf32>
    %42 = vector.extract_strided_slice %40 {offsets = [0, 1, 0], sizes = [2, 10, 8], strides = [1, 1, 1]} : vector<2x12x8xf32> to vector<2x10x8xf32>
    %43 = vector.extract_strided_slice %40 {offsets = [0, 2, 0], sizes = [2, 10, 8], strides = [1, 1, 1]} : vector<2x12x8xf32> to vector<2x10x8xf32>
    %44 = tpu.concatenate %41, %42, %43 in 2 : vector<2x10x8xf32>, vector<2x10x8xf32>, vector<2x10x8xf32> -> vector<2x10x24xf32>
    %45 = vector.shape_cast %44 : vector<2x10x24xf32> to vector<20x24xf32>
    %cst_23 = arith.constant dense<0.000000e+00> : vector<20x16xf32>
    %46 = tpu.matmul %45, %34, %cst_23 {dimension_numbers = #tpu.dot_dimension_numbers<[1], [0], [0], [1], [0, 0, 1, 1], [], []>} : vector<20x24xf32>, vector<24x16xf32>, vector<20x16xf32> -> vector<20x16xf32>
    %47 = vector.broadcast %35 : vector<1x16xf32> to vector<20x16xf32>
    %48 = arith.addf %46, %47 : vector<20x16xf32>
    %cst_24 = arith.constant 0.000000e+00 : f32
    %49 = vector.broadcast %cst_24 : f32 to vector<20x16xf32>
    %50 = arith.cmpf oge, %48, %49 : vector<20x16xf32>
    %cst_25 = arith.constant 0.00999999977 : f32
    %51 = vector.broadcast %cst_25 : f32 to vector<20x16xf32>
    %52 = arith.mulf %51, %48 : vector<20x16xf32>
    %53 = arith.select %50, %48, %52 : vector<20x16xi1>, vector<20x16xf32>
    %54 = vector.shape_cast %53 : vector<20x16xf32> to vector<2x10x16xf32>
    %55 = vector.extract_strided_slice %54 {offsets = [0, 0, 0], sizes = [2, 8, 16], strides = [1, 1, 1]} : vector<2x10x16xf32> to vector<2x8x16xf32>
    %56 = vector.extract_strided_slice %54 {offsets = [0, 1, 0], sizes = [2, 8, 16], strides = [1, 1, 1]} : vector<2x10x16xf32> to vector<2x8x16xf32>
    %57 = vector.extract_strided_slice %54 {offsets = [0, 2, 0], sizes = [2, 8, 16], strides = [1, 1, 1]} : vector<2x10x16xf32> to vector<2x8x16xf32>
    %58 = tpu.concatenate %55, %56, %57 in 2 : vector<2x8x16xf32>, vector<2x8x16xf32>, vector<2x8x16xf32> -> vector<2x8x48xf32>
    %59 = vector.shape_cast %58 : vector<2x8x48xf32> to vector<16x48xf32>
    %cst_26 = arith.constant dense<0.000000e+00> : vector<16x8xf32>
    %60 = tpu.matmul %59, %36, %cst_26 {dimension_numbers = #tpu.dot_dimension_numbers<[1], [0], [0], [1], [0, 0, 1, 1], [], []>} : vector<16x48xf32>, vector<48x8xf32>, vector<16x8xf32> -> vector<16x8xf32>
    %61 = vector.broadcast %37 : vector<1x8xf32> to vector<16x8xf32>
    %62 = arith.addf %60, %61 : vector<16x8xf32>
    %63 = math.tanh %62 : vector<16x8xf32>
    %64 = vector.shape_cast %63 : vector<16x8xf32> to vector<2x8x8xf32>
    %65 = arith.addf %0, %64 : vector<2x8x8xf32>
    %66 = tpu.transpose %65, [0, 2, 1] : vector<2x8x8xf32> -> vector<2x8x8xf32>
    %c0_27 = arith.constant 0 : index
    %c0_28 = arith.constant 0 : index
    %c0_29 = arith.constant 0 : index
    %67 = vector.load %arg9[%c0_27, %c0_28, %c0_29] : memref<2x8x8xf32, #tpu.memory_space<vmem>>, vector<2x8x8xf32>
    tpu.vector_store %arg9[%c0_27, %c0_28, %c0_29], %66 {strides = array<i32>} : memref<2x8x8xf32, #tpu.memory_space<vmem>>, vector<2x8x8xf32>,
    %68 = tpu.transpose %33, [0, 2, 1] : vector<2x8x8xf32> -> vector<2x8x8xf32>
    %c0_30 = arith.constant 0 : index
    %c0_31 = arith.constant 0 : index
    %c0_32 = arith.constant 0 : index
    %69 = vector.load %arg10[%c0_30, %c0_31, %c0_32] : memref<2x8x8xf32, #tpu.memory_space<vmem>>, vector<2x8x8xf32>
    tpu.vector_store %arg10[%c0_30, %c0_31, %c0_32], %68 {strides = array<i32>} : memref<2x8x8xf32, #tpu.memory_space<vmem>>, vector<2x8x8xf32>,
    return
  }
}

</mosaic_0001>

<bundles_post_ra>
// kernel: lifting_scheme_level.1
= control target key start
LH: loop header
LB: loop body
LE: loop exit
PB: predicated region body
PF: predicated region fallthrough
CT: control target
= control target key end

     0   :  { %16 = vsyncpa [#allocation3], 0  ;;  %vm72_vm0 = vcmask 1040384   ;;  %vm75_vm1 = vcmask 1041408   ;;  %vm80_vm2 = vcmask 1042432   ;;  %vm87_vm3 = vcmask 1046528   ;;  %s1141_s0 = inlined_call_operand.vmem [shape: f32[2,16,8], index: 0, kind: input, shape index: {}]   ;;  %s1142_s1 = inlined_call_operand.vmem [shape: f32[24,16], index: 1, kind: input, shape index: {}]   ;;  %s1143_s2 = inlined_call_operand.vmem [shape: f32[1,16], index: 2, kind: input, shape index: {}]   ;;  %s1144_s3 = inlined_call_operand.vmem [shape: f32[48,8], index: 3, kind: input, shape index: {}]   ;;  %s1145_s4 = inlined_call_operand.vmem [shape: f32[1,8], index: 4, kind: input, shape index: {}]   ;;  %s1146_s5 = inlined_call_operand.vmem [shape: f32[24,16], index: 5, kind: input, shape index: {}]   ;;  %s1147_s6 = inlined_call_operand.vmem [shape: f32[1,16], index: 6, kind: input, shape index: {}]   ;;  %s1148_s7 = inlined_call_operand.vmem [shape: f32[48,8], index: 7, kind: input, shape index: {}]   ;;  %s1149_s8 = inlined_call_operand.vmem [shape: f32[1,8], index: 8, kind: input, shape index: {}]   ;;  %s1150_s9 = inlined_call_operand.hbm [shape: f32[2,8,8], index: 9, kind: output, shape index: {0}]   ;;  %s1151_s10 = inlined_call_operand.hbm [shape: f32[2,8,8], index: 10, kind: output, shape index: {1}]  }
   0x1   :  { %v931_v0 = vld [vmem:[%s1141_s0 + $0x10] ss:$2 sm:$0xff]  ;;  %v940_v5 = vld [vmem:[%s1141_s0] ss:$2 sm:$0xff] }
   0x2   :  { %v57_v1 = vrot.slane %v931_v0, 7  ;;  %v61_v2 = vrot.slane %v931_v0, 6  ;;  %v65_v3 = vrot.slane %v931_v0, 5  ;;  %v69_v4 = vrot.slane %v931_v0, 4 }
   0x3   :  { %v56_v8 = vrot.slane %v940_v5, 7  ;;  %v60_v9 = vrot.slane %v940_v5, 6  ;;  %v64_v12 = vrot.slane %v940_v5, 5  ;;  %v68_v13 = vrot.slane %v940_v5, 4 }
   0x4   :  { %v74_v6 = vsel %vm72_vm0, %v931_v0, %v57_v1  ;;  %v79_v7 = vsel %vm75_vm1, %v61_v2, %v65_v3 }
   0x5   :  { %v77_v10 = vsel %vm75_vm1, %v74_v6, %v61_v2  ;;  %v949_v11 = vsel %vm80_vm2, %v79_v7, %v69_v4 }
   0x6   :  { %17 = vsyncpa [#allocation5], 0  ;;  %v91_v14 = vrot.slane %v77_v10, 1  ;;  %v92_v15 = vrot.slane %v949_v11, 1  ;;  %v73_v16 = vsel %vm72_vm0, %v940_v5, %v56_v8  ;;  %v78_v18 = vsel %vm75_vm1, %v60_v9, %v64_v12  ;;  %s867_s17 = smov 8   ;;  %s868_s18 = smov 16  }
   0x7   :  { %v76_v17 = vsel %vm75_vm1, %v73_v16, %v60_v9  ;;  %v81_v20 = vsel %vm80_vm2, %v78_v18, %v68_v13  ;;  %v110_v23 = vrot.slane %v77_v10, 2  ;;  %v111_v24 = vrot.slane %v949_v11, 2  ;;  %v45_v34 = vld [vmem:[%s1142_s1 + $0x10] sm:$0xff]  ;;  %v44_v35 = vld [vmem:[%s1142_s1 + $0x8] sm:$0xff]  ;;  %v43_v36 = vld [vmem:[%s1142_s1] sm:$0xff]  ;;  %s871_s23 = smov [#allocation2]  }
   0x8   :  { %v93_v19 = vsel %vm87_vm3, %v91_v14, %v92_v15  ;;  %v88_v21 = vrot.slane %v76_v17, 1  ;;  %v89_v22 = vrot.slane %v81_v20, 1  ;;  %vm106_vm4 = vcmask 1045504   ;;  %188 = vmatpush.msra.mxu0 %v45_v34  ;;  %v803_v58 = vld [vmem:[%s1143_s2] ss:$0 sm:$0xff]  ;;  %s869_s2 = smov 32  }
   0x9   :  { %98 = vrot.lane.b32.xlu1 %v93_v19, %s867_s17  ;;  %v107_v26 = vrot.slane %v76_v17, 2  ;;  %v108_v27 = vrot.slane %v81_v20, 2  ;;  %v112_v28 = vsel %vm106_vm4, %v110_v23, %v111_v24  ;;  %vm125_vm5 = vcmask 64512   ;;  %v48_v34 = vld [vmem:[%s1144_s3 + $0x8] sm:$0xff]  ;;  %s753_s25 = sshll.u32 %s1150_s9, 4  ;;  %s872_s26 = smov 128   ;;  %s754_s25 = int_to_ptr.hbm [resolvable:$true] %s753_s25 }
   0xa   :  { %v90_v25 = vsel %vm87_vm3, %v88_v21, %v89_v22  ;;  %96 = vrot.lane.b32.xlu2 %v89_v22, %s867_s17  ;;  %vm130_vm6 = vcmask 130048   ;;  %189 = vmatpush.msra.mxu0 %v44_v35  ;;  %vm168_vm7 = vcmask 195584   ;;  %v47_v35 = vld [vmem:[%s1144_s3] sm:$0xff]  ;;  %vm294_vm11 = vcmask 261120  }
   0xb   :  { %94 = vrot.lane.b32.xlu0 %v90_v25, %s867_s17  ;;  %v109_v29 = vsel %vm106_vm4, %v107_v26, %v108_v27  ;;  %vm300_vm12 = vcmask 392192  }
   0xc   :  { %190 = vmatpush.msra.mxu0 %v43_v36 }
  0x11   :  { %117 = vrot.lane.b32.xlu1 %v112_v28, %s868_s18 }
  0x12   :  { %115 = vrot.lane.b32.xlu2 %v108_v27, %s868_s18 }
  0x13   :  { %113 = vrot.lane.b32.xlu0 %v109_v29, %s868_s18 }
  0x19   :  { %119 = vrot.lane.b32.xlu1 %v111_v24, %s868_s18 }
  0x1b   :  { %100 = vrot.lane.b32.xlu0 %v92_v15, %s867_s17 }
  0x64   :  { %v97_v30 = vpop.permute.xlu2 %96 }
  0x65   :  { %v127_v31 = vsel %vm125_vm5, %v81_v20, %v97_v30  ;;  %v52_v30 = vld [vmem:[%s1144_s3 + $0x28] sm:$0xff] }
  0x66   :  { %317 = vmatpush.msra.mxu1 %v52_v30 }
  0x6c   :  { %v116_v32 = vpop.permute.xlu2 %115 }
  0x6d   :  { %v132_v33 = vsel %vm130_vm6, %v127_v31, %v116_v32  ;;  %v51_v31 = vld [vmem:[%s1144_s3 + $0x20] sm:$0xff]  ;;  %v50_v32 = vld [vmem:[%s1144_s3 + $0x18] sm:$0xff] }
  0x6e   :  { %156 = vst [vmem:[#allocation1 + $0x20] ss:$4 sm:$0xff] %v132_v33  ;;  %318 = vmatpush.msra.mxu1 %v51_v31  ;;  %v49_v33 = vld [vmem:[%s1144_s3 + $0x10] sm:$0xff] }
  0x70   :  { %319 = vmatpush.msra.mxu1 %v50_v32 }
  0x72   :  { %320 = vmatpush.msra.mxu1 %v49_v33 }
  0x74   :  { %321 = vmatpush.msra.mxu1 %v48_v34 }
  0x76   :  { %322 = vmatpush.msra.mxu1 %v47_v35 }
  0x7b   :  { %v99_v37 = vpop.permute.xlu1 %98 }
  0x7c   :  { %v128_v39 = vsel %vm125_vm5, %v77_v10, %v99_v37 }
  0x7d   :  { %v95_v38 = vpop.permute.xlu0 %94 }
  0x7e   :  { %v126_v44 = vsel %vm125_vm5, %v76_v17, %v95_v38 }
  0x83   :  { %v118_v40 = vpop.permute.xlu1 %117 }
  0x84   :  { %v133_v41 = vsel %vm130_vm6, %v128_v39, %v118_v40 }
  0x85   :  { %v142_v42 = vrot.slane %v133_v41, 2  ;;  %v143_v43 = vrot.slane %v133_v41, 4  ;;  %158 = vst [vmem:[#allocation1 + $0x21] ss:$4 sm:$0xff] %v133_v41  ;;  %v114_v45 = vpop.permute.xlu0 %113  ;;  %v144_v53 = vrot.slane %v133_v41, 6 }
  0x86   :  { %v131_v46 = vsel %vm130_vm6, %v126_v44, %v114_v45  ;;  %v804_v44 = vld [vmem:[%s1145_s4] ss:$0 sm:$0xff]  ;;  %s766_s4 = sshll.u32 %s1151_s10, 4  ;;  %s767_s4 = int_to_ptr.hbm [resolvable:$true] %s766_s4 }
  0x87   :  { %160 = vst [vmem:[#allocation1 + $0x22] ss:$4 sm:$0xff] %v142_v42  ;;  %v139_v47 = vrot.slane %v131_v46, 2  ;;  %v140_v48 = vrot.slane %v131_v46, 4  ;;  %v141_v49 = vrot.slane %v131_v46, 6 }
  0x88   :  { %162 = vst [vmem:[#allocation1 + $0x23] ss:$4 sm:$0xff] %v143_v43 }
  0x89   :  { %148 = vst [vmem:[#allocation1] ss:$4 sm:$0xff] %v131_v46 }
  0x8a   :  { %150 = vst [vmem:[#allocation1 + $0x1] ss:$4 sm:$0xff] %v139_v47  ;;  %v784_v47 = vld [vmem:[%s1141_s0 + $0x1] ss:$2 sm:$0xff] }
  0x8b   :  { %152 = vst [vmem:[#allocation1 + $0x2] ss:$4 sm:$0xff] %v140_v48  ;;  %v120_v52 = vpop.permute.xlu1 %119 }
  0x8c   :  { %154 = vst [vmem:[#allocation1 + $0x3] ss:$4 sm:$0xff] %v141_v49 }
  0x8d   :  { %v101_v50 = vpop.permute.xlu0 %100 }
  0x8e   :  { %v129_v51 = vsel %vm125_vm5, %v949_v11, %v101_v50 }
  0x8f   :  { %v134_v54 = vsel %vm130_vm6, %v129_v51, %v120_v52  ;;  %v164_v56 = vld.sshfl [vmem:[#allocation1 + $0x20] sm:$0xff pattern:$0x73625140] }
  0x93   :  { %v163_v55 = vld.sshfl [vmem:[#allocation1] sm:$0xff pattern:$0x73625140] }
  0x94   :  { %165 = vst [vmem:[#allocation1] ss:$4 sm:$0xff] %v144_v53  ;;  %786 = vmatmul.msk.f32.vlgmr.msra.gmra.mxu0 %vm168_vm7, %v163_v55 }
  0x95   :  { %166 = vst [vmem:[#allocation1 + $0x1] ss:$4 sm:$0xff] %v134_v54 }
  0x9c   :  { %787 = vmatmul.msk.f32.gmra.mxu0 %vm168_vm7, %v164_v56  ;;  %v167_v57 = vld.sshfl [vmem:[#allocation1] sm:$0xff pattern:$0x73625140] }
  0xa4   :  { %788 = vmatmul.msk.f32.gmra.mxu0 %vm168_vm7, %v167_v57 }
 0x111   :  { %v192_v59 = vpop.f32.mrf.mxu0 }
 0x112   :  { %v193_v60 = vadd.f32 %v803_v58, %v192_v59 }
 0x114   :  { %vm201_vm8 = vcmp.ge.f32.partialorder %v193_v60, 0.0  ;;  %v204_v61 = vmul.f32 0.01, %v193_v60 }
 0x116   :  { %v207_v62 = vsel %vm201_vm8, %v193_v60, %v204_v61 }
 0x117   :  { %v213_v63 = vrot.slane %v207_v62, 2  ;;  %v214_v1 = vrot.slane %v207_v62, 4  ;;  %v215_v2 = vrot.slane %v207_v62, 6  ;;  %220 = vst [vmem:[#allocation1] ss:$4 sm:$0xff] %v207_v62 }
 0x119   :  { %222 = vst [vmem:[#allocation1 + $0x1] ss:$4 sm:$0xff] %v213_v63  ;;  %v195_v3 = vpop.f32.mrf.mxu0 }
 0x11a   :  { %224 = vst [vmem:[#allocation1 + $0x2] ss:$4 sm:$0xff] %v214_v1  ;;  %v196_v4 = vadd.f32 %v803_v58, %v195_v3 }
 0x11b   :  { %226 = vst [vmem:[#allocation1 + $0x3] ss:$4 sm:$0xff] %v215_v2 }
 0x11c   :  { %vm202_vm9 = vcmp.ge.f32.partialorder %v196_v4, 0.0  ;;  %v205_v6 = vmul.f32 0.01, %v196_v4 }
 0x11e   :  { %v208_v7 = vsel %vm202_vm9, %v196_v4, %v205_v6 }
 0x11f   :  { %v216_v8 = vrot.slane %v208_v7, 2  ;;  %v217_v9 = vrot.slane %v208_v7, 4  ;;  %v218_v13 = vrot.slane %v208_v7, 6 }
 0x121   :  { %229 = vst [vmem:[#allocation1 + $0x20] ss:$4 sm:$0xff] %v216_v8  ;;  %v198_v10 = vpop.f32.mrf.mxu0 }
 0x122   :  { %v227_v11 = vld.sshfl [vmem:[#allocation1] sm:$0xff pattern:$0x73625140]  ;;  %231 = vst [vmem:[#allocation1 + $0x21] ss:$4 sm:$0xff] %v217_v9  ;;  %v199_v12 = vadd.f32 %v803_v58, %v198_v10 }
 0x123   :  { %239 = vst [vmem:[#allocation1] ss:$4 sm:$0xff] %v207_v62  ;;  %v785_v58 = vld [vmem:[%s1141_s0 + $0x11] ss:$2 sm:$0xff]  ;;  %s751_s0 = sshll.u32 %s871_s23, 4  ;;  %s752_s0 = int_to_ptr.vmem [resolvable:$true] %s751_s0 }
 0x124   :  { %241 = vst [vmem:[#allocation1 + $0x1] ss:$4 sm:$0xff] %v213_v63  ;;  %vm203_vm10 = vcmp.ge.f32.partialorder %v199_v12, 0.0  ;;  %v206_v14 = vmul.f32 0.01, %v199_v12 }
 0x125   :  { %243 = vst [vmem:[#allocation1 + $0x2] ss:$4 sm:$0xff] %v214_v1 }
 0x126   :  { %245 = vst [vmem:[#allocation1 + $0x3] ss:$4 sm:$0xff] %v215_v2  ;;  %v209_v15 = vsel %vm203_vm10, %v199_v12, %v206_v14 }
 0x127   :  { %233 = vst [vmem:[#allocation1 + $0x22] ss:$4 sm:$0xff] %v218_v13  ;;  %v219_v18 = vrot.slane %v209_v15, 2 }
 0x128   :  { %235 = vst [vmem:[#allocation1 + $0x23] ss:$4 sm:$0xff] %v209_v15 }
 0x12d   :  { %v248_v16 = vld.sshfl [vmem:[#allocation1] sm:$0xff pattern:$0x73625140] }
 0x12e   :  { %250 = vst [vmem:[#allocation1] ss:$4 sm:$0xff] %v216_v8  ;;  %v257_v20 = vrot.slane %v248_v16, 1 }
 0x12f   :  { %251 = vst [vmem:[#allocation1 + $0x1] ss:$4 sm:$0xff] %v217_v9  ;;  %v236_v17 = vld.sshfl [vmem:[#allocation1 + $0x20] sm:$0xff pattern:$0x73625140] }
 0x130   :  { %252 = vst [vmem:[#allocation1 + $0x2] ss:$4 sm:$0xff] %v218_v13 }
 0x131   :  { %247 = vst [vmem:[#allocation1 + $0x20] ss:$4 sm:$0xff] %v208_v7 }
 0x132   :  { %253 = vst [vmem:[#allocation1 + $0x3] ss:$4 sm:$0xff] %v209_v15 }
 0x138   :  { %v249_v19 = vld.sshfl [vmem:[#allocation1 + $0x20] sm:$0xff pattern:$0x73625140] }
 0x139   :  { %254 = vst [vmem:[#allocation1 + $0x20] ss:$4 sm:$0xff] %v219_v18  ;;  %v255_v21 = vld.sshfl [vmem:[#allocation1] sm:$0xff pattern:$0x73625140]  ;;  %v258_v22 = vrot.slane %v249_v19, 1 }
 0x13a   :  { %269 = vst [vmem:[#allocation1] ss:$4 sm:$0xff] %v213_v63  ;;  %v260_v25 = vrot.slane %v255_v21, 1  ;;  %v336_v21 = vld [vmem:[%s1146_s5 + $0x10] sm:$0xff] }
 0x13b   :  { %271 = vst [vmem:[#allocation1 + $0x1] ss:$4 sm:$0xff] %v214_v1  ;;  %v259_v23 = vsel %vm87_vm3, %v257_v20, %v258_v22  ;;  %471 = vmatpush.msra.mxu2 %v336_v21  ;;  %v335_v22 = vld [vmem:[%s1146_s5 + $0x8] sm:$0xff] }
 0x13c   :  { %273 = vst [vmem:[#allocation1 + $0x2] ss:$4 sm:$0xff] %v215_v2  ;;  %263 = vrot.lane.b32.xlu2 %v259_v23, %s868_s18  ;;  %v334_v23 = vld [vmem:[%s1146_s5] sm:$0xff] }
 0x13d   :  { %275 = vst [vmem:[#allocation1 + $0x3] ss:$4 sm:$0xff] %v208_v7  ;;  %472 = vmatpush.msra.mxu2 %v335_v22 }
 0x13f   :  { %473 = vmatpush.msra.mxu2 %v334_v23  ;;  %v343_v23 = vld [vmem:[%s1148_s7 + $0x28] sm:$0xff] }
 0x140   :  { %v256_v24 = vld.sshfl [vmem:[#allocation1 + $0x20] sm:$0xff pattern:$0x73625140]  ;;  %598 = vmatpush.msra.mxu3 %v343_v23 }
 0x141   :  { %278 = vst [vmem:[#allocation1 + $0x20] ss:$4 sm:$0xff] %v217_v9  ;;  %v261_v26 = vrot.slane %v256_v24, 1 }
 0x142   :  { %280 = vst [vmem:[#allocation1 + $0x21] ss:$4 sm:$0xff] %v218_v13 }
 0x143   :  { %282 = vst [vmem:[#allocation1 + $0x22] ss:$4 sm:$0xff] %v209_v15  ;;  %v262_v27 = vsel %vm87_vm3, %v260_v25, %v261_v26 }
 0x144   :  { %v276_v28 = vld.sshfl [vmem:[#allocation1] sm:$0xff pattern:$0x73625140]  ;;  %284 = vst [vmem:[#allocation1 + $0x23] ss:$4 sm:$0xff] %v219_v18  ;;  %265 = vrot.lane.b32.xlu1 %v262_v27, %s868_s18 }
 0x145   :  { %286 = vrot.lane.b32.xlu0 %v276_v28, %s869_s2 }
 0x14b   :  { %v285_v29 = vld.sshfl [vmem:[#allocation1 + $0x20] sm:$0xff pattern:$0x73625140] }
 0x14c   :  { %288 = vrot.lane.b32.xlu2 %v285_v29, %s869_s2 }
 0x196   :  { %v264_v36 = vpop.permute.xlu2 %263 }
 0x197   :  { %v292_v37 = vsel %vm130_vm6, %v227_v11, %v264_v36 }
 0x1a6   :  { %v289_v42 = vpop.permute.xlu2 %288 }
 0x1b6   :  { %v266_v40 = vpop.permute.xlu1 %265 }
 0x1b7   :  { %v287_v38 = vpop.permute.xlu0 %286  ;;  %v293_v41 = vsel %vm130_vm6, %v236_v17, %v266_v40 }
 0x1b8   :  { %v295_v39 = vsel %vm294_vm11, %v292_v37, %v287_v38  ;;  %v296_v43 = vsel %vm294_vm11, %v293_v41, %v289_v42 }
 0x1b9   :  { %789 = vmatmul.msk.f32.vlgmr.msra.gmra.mxu1 %vm300_vm12, %v295_v39 }
 0x1c1   :  { %790 = vmatmul.msk.f32.gmra.mxu1 %vm300_vm12, %v296_v43 }
 0x236   :  { %v324_v45 = vpop.f32.mrf.mxu1 }
 0x237   :  { %v325_v46 = vadd.f32 %v804_v44, %v324_v45 }
 0x239   :  { %807 = vtanh.f32 %v325_v46 }
 0x23e   :  { %v327_v48 = vpop.f32.mrf.mxu1 }
 0x23f   :  { %v808_v49 = vpop.eup %807  ;;  %v328_v50 = vadd.f32 %v804_v44, %v327_v48 }
 0x240   :  { %v1032_v51 = vsub.f32 %v784_v47, %v808_v49  ;;  %v805_v49 = vld [vmem:[%s1147_s6] ss:$0 sm:$0xff] }
 0x241   :  { %809 = vtanh.f32 %v328_v50 }
 0x242   :  { %v347_v52 = vrot.slane %v1032_v51, 7  ;;  %v351_v53 = vrot.slane %v1032_v51, 6  ;;  %v355_v54 = vrot.slane %v1032_v51, 5  ;;  %v359_v55 = vrot.slane %v1032_v51, 4 }
 0x244   :  { %v363_v56 = vsel %vm72_vm0, %v1032_v51, %v347_v52  ;;  %v367_v57 = vsel %vm75_vm1, %v351_v53, %v355_v54 }
 0x245   :  { %v365_v59 = vsel %vm75_vm1, %v363_v56, %v351_v53  ;;  %v369_v60 = vsel %vm80_vm2, %v367_v57, %v359_v55 }
 0x246   :  { %v375_v61 = vrot.slane %v365_v59, 1  ;;  %v376_v62 = vrot.slane %v369_v60, 1  ;;  %v393_v63 = vrot.slane %v365_v59, 2  ;;  %v394_v1 = vrot.slane %v369_v60, 2 }
 0x247   :  { %v810_v2 = vpop.eup %809 }
 0x248   :  { %v1046_v3 = vsub.f32 %v785_v58, %v810_v2  ;;  %v377_v4 = vsel %vm87_vm3, %v375_v61, %v376_v62  ;;  %v395_v6 = vsel %vm106_vm4, %v393_v63, %v394_v1 }
 0x249   :  { %381 = vrot.lane.b32.xlu0 %v377_v4, %s867_s17  ;;  %399 = vrot.lane.b32.xlu1 %v395_v6, %s868_s18 }
 0x24a   :  { %v348_v7 = vrot.slane %v1046_v3, 7  ;;  %v352_v8 = vrot.slane %v1046_v3, 6  ;;  %v356_v9 = vrot.slane %v1046_v3, 5  ;;  %v360_v10 = vrot.slane %v1046_v3, 4 }
 0x24c   :  { %v364_v11 = vsel %vm72_vm0, %v1046_v3, %v348_v7  ;;  %v368_v12 = vsel %vm75_vm1, %v352_v8, %v356_v9 }
 0x24d   :  { %v366_v13 = vsel %vm75_vm1, %v364_v11, %v352_v8  ;;  %v370_v14 = vsel %vm80_vm2, %v368_v12, %v360_v10 }
 0x24e   :  { %v396_v15 = vrot.slane %v366_v13, 2  ;;  %v397_v16 = vrot.slane %v370_v14, 2  ;;  %v378_v17 = vrot.slane %v366_v13, 1  ;;  %v379_v18 = vrot.slane %v370_v14, 1 }
 0x250   :  { %v398_v19 = vsel %vm106_vm4, %v396_v15, %v397_v16  ;;  %v380_v20 = vsel %vm87_vm3, %v378_v17, %v379_v18 }
 0x251   :  { %383 = vrot.lane.b32.xlu1 %v376_v62, %s867_s17  ;;  %403 = vrot.lane.b32.xlu0 %v398_v19, %s868_s18 }
 0x252   :  { %385 = vrot.lane.b32.xlu2 %v380_v20, %s867_s17 }
 0x259   :  { %405 = vrot.lane.b32.xlu1 %v397_v16, %s868_s18  ;;  %387 = vrot.lane.b32.xlu0 %v379_v18, %s867_s17 }
 0x25a   :  { %401 = vrot.lane.b32.xlu2 %v394_v1, %s868_s18 }
 0x2ac   :  { %v386_v24 = vpop.permute.xlu2 %385 }
 0x2ad   :  { %v413_v32 = vsel %vm125_vm5, %v366_v13, %v386_v24  ;;  %v342_v24 = vld [vmem:[%s1148_s7 + $0x20] sm:$0xff] }
 0x2ae   :  { %599 = vmatpush.msra.mxu3 %v342_v24 }
 0x2b4   :  { %v402_v35 = vpop.permute.xlu2 %401 }
 0x2bb   :  { %v382_v25 = vpop.permute.xlu0 %381  ;;  %v400_v26 = vpop.permute.xlu1 %399 }
 0x2bc   :  { %v411_v27 = vsel %vm125_vm5, %v365_v59, %v382_v25  ;;  %v341_v25 = vld [vmem:[%s1148_s7 + $0x18] sm:$0xff] }
 0x2bd   :  { %v415_v28 = vsel %vm130_vm6, %v411_v27, %v400_v26  ;;  %v340_v26 = vld [vmem:[%s1148_s7 + $0x10] sm:$0xff]  ;;  %600 = vmatpush.msra.mxu3 %v341_v25  ;;  %v338_v27 = vld [vmem:[%s1148_s7] sm:$0xff] }
 0x2be   :  { %v423_v29 = vrot.slane %v415_v28, 2  ;;  %v424_v30 = vrot.slane %v415_v28, 4  ;;  %v425_v31 = vrot.slane %v415_v28, 6  ;;  %432 = vst [vmem:[#allocation1] ss:$4 sm:$0xff] %v415_v28 }
 0x2bf   :  { %601 = vmatpush.msra.mxu3 %v340_v26 }
 0x2c0   :  { %434 = vst [vmem:[#allocation1 + $0x1] ss:$4 sm:$0xff] %v423_v29 }
 0x2c1   :  { %436 = vst [vmem:[#allocation1 + $0x2] ss:$4 sm:$0xff] %v424_v30 }
 0x2c2   :  { %438 = vst [vmem:[#allocation1 + $0x3] ss:$4 sm:$0xff] %v425_v31 }
 0x2c3   :  { %v384_v33 = vpop.permute.xlu1 %383  ;;  %v404_v34 = vpop.permute.xlu0 %403 }
 0x2c4   :  { %v412_v36 = vsel %vm125_vm5, %v369_v60, %v384_v33  ;;  %v417_v37 = vsel %vm130_vm6, %v413_v32, %v404_v34 }
 0x2c5   :  { %v416_v38 = vsel %vm130_vm6, %v412_v36, %v402_v35  ;;  %v426_v39 = vrot.slane %v417_v37, 2  ;;  %v427_v40 = vrot.slane %v417_v37, 4  ;;  %442 = vst [vmem:[#allocation1 + $0x21] ss:$4 sm:$0xff] %v417_v37  ;;  %v428_v41 = vrot.slane %v417_v37, 6 }
 0x2c6   :  { %440 = vst [vmem:[#allocation1 + $0x20] ss:$4 sm:$0xff] %v416_v38  ;;  %v806_v36 = vld [vmem:[%s1149_s8] ss:$0 sm:$0xff] }
 0x2c7   :  { %444 = vst [vmem:[#allocation1 + $0x22] ss:$4 sm:$0xff] %v426_v39 }
 0x2c8   :  { %446 = vst [vmem:[#allocation1 + $0x23] ss:$4 sm:$0xff] %v427_v40 }
 0x2c9   :  { %v447_v42 = vld.sshfl [vmem:[#allocation1] sm:$0xff pattern:$0x73625140] }
 0x2ca   :  { %449 = vst [vmem:[#allocation1] ss:$4 sm:$0xff] %v428_v41  ;;  %791 = vmatmul.msk.f32.vlgmr.msra.gmra.mxu2 %vm168_vm7, %v447_v42 }
 0x2cb   :  { %v388_v43 = vpop.permute.xlu0 %387  ;;  %v406_v44 = vpop.permute.xlu1 %405 }
 0x2cc   :  { %v414_v45 = vsel %vm125_vm5, %v370_v14, %v388_v43 }
 0x2cd   :  { %v418_v46 = vsel %vm130_vm6, %v414_v45, %v406_v44 }
 0x2ce   :  { %450 = vst [vmem:[#allocation1 + $0x1] ss:$4 sm:$0xff] %v418_v46 }
 0x2cf   :  { %v448_v47 = vld.sshfl [vmem:[#allocation1 + $0x20] sm:$0xff pattern:$0x73625140] }
 0x2d2   :  { %792 = vmatmul.msk.f32.gmra.mxu2 %vm168_vm7, %v448_v47 }
 0x2d5   :  { %v451_v48 = vld.sshfl [vmem:[#allocation1] sm:$0xff pattern:$0x73625140] }
 0x2da   :  { %793 = vmatmul.msk.f32.gmra.mxu2 %vm168_vm7, %v451_v48 }
 0x34d   :  { %v475_v50 = vpop.f32.mrf.mxu2 }
 0x34e   :  { %v476_v52 = vadd.f32 %v805_v49, %v475_v50 }
 0x350   :  { %vm484_vm13 = vcmp.ge.f32.partialorder %v476_v52, 0.0  ;;  %v487_v53 = vmul.f32 0.01, %v476_v52 }
 0x352   :  { %v490_v54 = vsel %vm484_vm13, %v476_v52, %v487_v53 }
 0x353   :  { %v496_v55 = vrot.slane %v490_v54, 2  ;;  %v497_v56 = vrot.slane %v490_v54, 4  ;;  %v498_v57 = vrot.slane %v490_v54, 6  ;;  %503 = vst [vmem:[#allocation1] ss:$4 sm:$0xff] %v490_v54 }
 0x355   :  { %505 = vst [vmem:[#allocation1 + $0x1] ss:$4 sm:$0xff] %v496_v55  ;;  %v478_v58 = vpop.f32.mrf.mxu2 }
 0x356   :  { %507 = vst [vmem:[#allocation1 + $0x2] ss:$4 sm:$0xff] %v497_v56  ;;  %v479_v59 = vadd.f32 %v805_v49, %v478_v58 }
 0x357   :  { %509 = vst [vmem:[#allocation1 + $0x3] ss:$4 sm:$0xff] %v498_v57 }
 0x358   :  { %vm485_vm14 = vcmp.ge.f32.partialorder %v479_v59, 0.0  ;;  %v488_v60 = vmul.f32 0.01, %v479_v59 }
 0x35a   :  { %v491_v61 = vsel %vm485_vm14, %v479_v59, %v488_v60 }
 0x35b   :  { %v499_v62 = vrot.slane %v491_v61, 2  ;;  %v500_v63 = vrot.slane %v491_v61, 4  ;;  %v501_v6 = vrot.slane %v491_v61, 6 }
 0x35d   :  { %512 = vst [vmem:[#allocation1 + $0x20] ss:$4 sm:$0xff] %v499_v62  ;;  %v481_v1 = vpop.f32.mrf.mxu2 }
 0x35e   :  { %v510_v2 = vld.sshfl [vmem:[#allocation1] sm:$0xff pattern:$0x73625140]  ;;  %514 = vst [vmem:[#allocation1 + $0x21] ss:$4 sm:$0xff] %v500_v63  ;;  %v482_v4 = vadd.f32 %v805_v49, %v481_v1 }
 0x35f   :  { %522 = vst [vmem:[#allocation1] ss:$4 sm:$0xff] %v490_v54 }
 0x360   :  { %524 = vst [vmem:[#allocation1 + $0x1] ss:$4 sm:$0xff] %v496_v55  ;;  %vm486_vm15 = vcmp.ge.f32.partialorder %v482_v4, 0.0  ;;  %v489_v7 = vmul.f32 0.01, %v482_v4 }
 0x361   :  { %526 = vst [vmem:[#allocation1 + $0x2] ss:$4 sm:$0xff] %v497_v56 }
 0x362   :  { %528 = vst [vmem:[#allocation1 + $0x3] ss:$4 sm:$0xff] %v498_v57  ;;  %v492_v8 = vsel %vm486_vm15, %v482_v4, %v489_v7 }
 0x363   :  { %516 = vst [vmem:[#allocation1 + $0x22] ss:$4 sm:$0xff] %v501_v6  ;;  %v502_v15 = vrot.slane %v492_v8, 2 }
 0x364   :  { %518 = vst [vmem:[#allocation1 + $0x23] ss:$4 sm:$0xff] %v492_v8 }
 0x369   :  { %v531_v9 = vld.sshfl [vmem:[#allocation1] sm:$0xff pattern:$0x73625140] }
 0x36a   :  { %533 = vst [vmem:[#allocation1] ss:$4 sm:$0xff] %v499_v62  ;;  %v540_v13 = vrot.slane %v531_v9, 1 }
 0x36b   :  { %534 = vst [vmem:[#allocation1 + $0x1] ss:$4 sm:$0xff] %v500_v63  ;;  %v519_v10 = vld.sshfl [vmem:[#allocation1 + $0x20] sm:$0xff pattern:$0x73625140] }
 0x36c   :  { %535 = vst [vmem:[#allocation1 + $0x2] ss:$4 sm:$0xff] %v501_v6 }
 0x36d   :  { %536 = vst [vmem:[#allocation1 + $0x3] ss:$4 sm:$0xff] %v492_v8 }
 0x36e   :  { %530 = vst [vmem:[#allocation1 + $0x20] ss:$4 sm:$0xff] %v491_v61 }
 0x374   :  { %v538_v11 = vld.sshfl [vmem:[#allocation1] sm:$0xff pattern:$0x73625140] }
 0x375   :  { %552 = vst [vmem:[#allocation1] ss:$4 sm:$0xff] %v496_v55  ;;  %v532_v12 = vld.sshfl [vmem:[#allocation1 + $0x20] sm:$0xff pattern:$0x73625140]  ;;  %v543_v19 = vrot.slane %v538_v11, 1 }
 0x376   :  { %554 = vst [vmem:[#allocation1 + $0x1] ss:$4 sm:$0xff] %v497_v56  ;;  %v541_v14 = vrot.slane %v532_v12, 1 }
 0x377   :  { %556 = vst [vmem:[#allocation1 + $0x2] ss:$4 sm:$0xff] %v498_v57 }
 0x378   :  { %558 = vst [vmem:[#allocation1 + $0x3] ss:$4 sm:$0xff] %v491_v61  ;;  %v542_v16 = vsel %vm87_vm3, %v540_v13, %v541_v14 }
 0x379   :  { %546 = vrot.lane.b32.xlu2 %v542_v16, %s868_s18  ;;  %537 = vst [vmem:[#allocation1 + $0x20] ss:$4 sm:$0xff] %v502_v15 }
 0x37f   :  { %v559_v17 = vld.sshfl [vmem:[#allocation1] sm:$0xff pattern:$0x73625140] }
 0x380   :  { %569 = vrot.lane.b32.xlu0 %v559_v17, %s869_s2  ;;  %v539_v18 = vld.sshfl [vmem:[#allocation1 + $0x20] sm:$0xff pattern:$0x73625140] }
 0x381   :  { %v544_v20 = vrot.slane %v539_v18, 1  ;;  %561 = vst [vmem:[#allocation1 + $0x20] ss:$4 sm:$0xff] %v500_v63 }
 0x382   :  { %563 = vst [vmem:[#allocation1 + $0x21] ss:$4 sm:$0xff] %v501_v6 }
 0x383   :  { %v545_v21 = vsel %vm87_vm3, %v543_v19, %v544_v20  ;;  %565 = vst [vmem:[#allocation1 + $0x22] ss:$4 sm:$0xff] %v492_v8 }
 0x384   :  { %548 = vrot.lane.b32.xlu1 %v545_v21, %s868_s18  ;;  %567 = vst [vmem:[#allocation1 + $0x23] ss:$4 sm:$0xff] %v502_v15 }
 0x38b   :  { %v568_v22 = vld.sshfl [vmem:[#allocation1 + $0x20] sm:$0xff pattern:$0x73625140] }
 0x38c   :  { %571 = vrot.lane.b32.xlu2 %v568_v22, %s869_s2 }
 0x3b2   :  { %681 = vxpose.xlu2.b32.start.end [1/1] (short) (narrow) %v1032_v51, 8  ;;  %v339_v51 = vld [vmem:[%s1148_s7 + $0x8] sm:$0xff]  ;;  %s870_s7 = smov [#allocation4]  }
 0x3b3   :  { %602 = vmatpush.msra.mxu3 %v339_v51  ;;  %s764_s8 = sshll.u32 %s870_s7, 4  ;;  %s765_s8 = int_to_ptr.vmem [resolvable:$true] %s764_s8 }
 0x3b5   :  { %603 = vmatpush.msra.mxu3 %v338_v27 }
 0x3d3   :  { %v547_v28 = vpop.permute.xlu2 %546 }
 0x3d4   :  { %v575_v29 = vsel %vm130_vm6, %v510_v2, %v547_v28 }
 0x3e6   :  { %v572_v34 = vpop.permute.xlu2 %571 }
 0x3f2   :  { %v570_v30 = vpop.permute.xlu0 %569 }
 0x3f3   :  { %v577_v31 = vsel %vm294_vm11, %v575_v29, %v570_v30 }
 0x3f4   :  { %794 = vmatmul.msk.f32.vlgmr.msra.gmra.mxu3 %vm300_vm12, %v577_v31 }
 0x3f6   :  { %v549_v32 = vpop.permute.xlu1 %548 }
 0x3f7   :  { %v576_v33 = vsel %vm130_vm6, %v519_v10, %v549_v32 }
 0x3f8   :  { %v578_v35 = vsel %vm294_vm11, %v576_v33, %v572_v34 }
 0x3fc   :  { %795 = vmatmul.msk.f32.gmra.mxu3 %vm300_vm12, %v578_v35 }
 0x44b   :  { %v697_v45 = vpop.trf.xlu2 }
 0x44c   :  { %745 = vst.msk [vmem:[#allocation4] sm:$0xff] %vm125_vm5, %v697_v45 }
 0x477   :  { %v605_v37 = vpop.f32.mrf.mxu3 }
 0x478   :  { %v606_v38 = vadd.f32 %v806_v36, %v605_v37 }
 0x47a   :  { %811 = vtanh.f32 %v606_v38 }
 0x47f   :  { %v608_v39 = vpop.f32.mrf.mxu3 }
 0x480   :  { %v812_v40 = vpop.eup %811  ;;  %v609_v41 = vadd.f32 %v806_v36, %v608_v39 }
 0x481   :  { %v613_v42 = vadd.f32 %v812_v40, %v940_v5 }
 0x482   :  { %813 = vtanh.f32 %v609_v41 }
 0x483   :  { %615 = vxpose.xlu0.b32.start.end [1/1] (short) (narrow) %v613_v42, 8 }
 0x488   :  { %v814_v43 = vpop.eup %813 }
 0x489   :  { %v614_v44 = vadd.f32 %v814_v43, %v931_v0 }
 0x48b   :  { %713 = vxpose.xlu0.b32.start.end [1/1] (short) (narrow) %v1046_v3, 8  ;;  %647 = vxpose.xlu1.b32.start.end [1/1] (short) (narrow) %v614_v44, 8 }
 0x527   :  { %v631_v46 = vpop.trf.xlu0 }
 0x528   :  { %679 = vst.msk [vmem:[#allocation2] sm:$0xff] %vm125_vm5, %v631_v46 }
 0x52f   :  { %v729_v0 = vpop.trf.xlu0  ;;  %v663_v5 = vpop.trf.xlu1 }
 0x530   :  { %746 = vst.msk [vmem:[#allocation4 + $0x8] sm:$0xff] %vm125_vm5, %v729_v0 }
 0x531   :  { %680 = vst.msk [vmem:[#allocation2 + $0x8] sm:$0xff] %vm125_vm5, %v663_v5  ;;  %772 = dma.vmem_to_hbm [thread:$0]  %s765_s8, 256, %s767_s4, [#allocation5], %s872_s26, %s872_s26, %s867_s17  }
 0x532   :  { %759 = dma.vmem_to_hbm [thread:$0]  %s752_s0, 256, %s754_s25, [#allocation3], %s872_s26, %s872_s26, %s867_s17  }
 0x533   :  { %863 = dma.done.wait [#allocation3], 256  }
 0x534   :  { %864 = vsyncadd [#allocation3], 4294967040 }
 0x535   :  { %865 = dma.done.wait [#allocation5], 256  }
 0x536   :  { %866 = vsyncadd [#allocation5], 4294967040 }
 0x537   :  { %781 = vsyncpa [#allocation3], 1 }
 0x538   :  { %782 = vsyncpa [#allocation5], 1 }

</bundles_post_ra>
